<compile_context>
chip_gen: v7x
topology: tpu7x:2x2x1
jax: 0.10.0
libtpu: 0.0.40
codegen_flags: <defaults>
</compile_context>

<pallas_src>
import functools

import jax
import jax.numpy as jnp
from jax.experimental import pallas as pl
from jax.experimental.pallas import tpu as pltpu


# ----------------------------------------------------------------------------
# Pallas kernel: shared MLP (folded conv+BN+ReLU) with running max over K
# ----------------------------------------------------------------------------
def _mlp_max_kernel(num_layers, *refs):
    x_ref = refs[0]          # (1, 1, TS, Cin)  one k-slice of one S-tile
    o_ref = refs[-1]         # (1, TS, Cout_padded)  resident across the K axis
    wb = refs[1:-1]          # [w0, b0, w1, b1, ...]  grid-invariant blocks

    kk = pl.program_id(2)

    @pl.when(kk == 0)
    def _init():
        o_ref[...] = jnp.full(o_ref.shape, -jnp.inf, dtype=jnp.float32)

    h = x_ref[0, 0]                                   # (TS, Cin) f32
    for i in range(num_layers):
        w = wb[2 * i][...]                            # (Ci, Co_p) bf16 (MXU operand)
        b = wb[2 * i + 1][...]                        # (1, Co_p)  f32
        h = jnp.dot(h.astype(jnp.bfloat16), w,
                    preferred_element_type=jnp.float32)
        h = jnp.maximum(h + b, 0.0)                   # bias + ReLU in f32 (VPU)

    # Running max over neighbors, accumulated in the resident output block.
    o_ref[0] = jnp.maximum(o_ref[0], h)


def _round_up(x, m):
    return (x + m - 1) // m * m


def _pick_s_tile(s, max_tile=256):
    """Largest S-tile <= max_tile that divides S and keeps sublane alignment."""
    if s <= max_tile:
        return s
    for ts in range(max_tile, 7, -1):
        if s % ts == 0 and ts % 8 == 0:
            return ts
    return s  # fall back to the full axis (always satisfies the (8,128) rule)


def mlp_max_pallas(grouped, weights, biases):
    """grouped: (B, K, S, Cin) f32; weights[i]: (Ci, Ci+1); biases[i]: (1, Ci+1).

    Returns (B, S, Cout) f32 == max over K of the shared MLP applied per point.
    """
    B, K, S, Cin = grouped.shape
    num_layers = len(weights)
    cout_true = weights[-1].shape[1]

    LANE = 128
    # Zero-pad every layer's output channels to lane width (lane-dense
    # activations + unmasked output stores); pre-cast weights to bf16 so the
    # MXU runs at native bf16 rate with f32 accumulation.
    padded_w, padded_b = [], []
    c_in = Cin
    for w, b in zip(weights, biases):
        ci, co = w.shape
        co_p = _round_up(co, LANE)
        wp = jnp.zeros((c_in, co_p), jnp.float32).at[:ci, :co].set(w)
        bp = jnp.zeros((1, co_p), jnp.float32).at[:, :co].set(jnp.reshape(b, (1, co)))
        padded_w.append(wp.astype(jnp.bfloat16))
        padded_b.append(bp)
        c_in = co_p
    cout_p = c_in

    TS = _pick_s_tile(S)
    grid = (B, S // TS, K)

    in_specs = [pl.BlockSpec((1, 1, TS, Cin), lambda b, s, kk: (b, kk, s, 0))]
    args = [grouped]
    for w, bb in zip(padded_w, padded_b):
        # TODO(synk): mark these grid-invariant blocks pipeline_mode=pl.Buffered(1)
        # to drop their second buffer once verified on all target generations.
        in_specs.append(pl.BlockSpec(w.shape, lambda b, s, kk: (0, 0)))
        in_specs.append(pl.BlockSpec(bb.shape, lambda b, s, kk: (0, 0)))
        args.append(w)
        args.append(bb)

    kernel = functools.partial(_mlp_max_kernel, num_layers)
    out_padded = pl.pallas_call(
        kernel,
        out_shape=jax.ShapeDtypeStruct((B, S, cout_p), jnp.float32),
        grid=grid,
        in_specs=in_specs,
        out_specs=pl.BlockSpec((1, TS, cout_p), lambda b, s, kk: (b, s, 0)),
        compiler_params=pltpu.CompilerParams(
            dimension_semantics=("parallel", "parallel", "arbitrary"),
            vmem_limit_bytes=32 * 1024 * 1024,
        ),
    )(*args)
    return out_padded[..., :cout_true]


# ----------------------------------------------------------------------------
# Plain-JAX glue: farthest point sampling and ball-query grouping
# ----------------------------------------------------------------------------
def farthest_point_sampling(points, nsamples):
    """points: (B, N, 3) -> indices: (B, nsamples) int32 (deterministic, start idx 0)."""
    def single(pts):
        n = pts.shape[0]

        def body(carry, _):
            dist, last_idx = carry
            d = jnp.sum((pts - pts[last_idx]) ** 2, axis=-1)
            dist = jnp.minimum(dist, d)
            next_idx = jnp.argmax(dist).astype(jnp.int32)
            return (dist, next_idx), last_idx

        init = (jnp.full((n,), 1e10, jnp.float32), jnp.int32(0))
        _, idxs = jax.lax.scan(body, init, None, length=nsamples)
        return idxs

    return jax.vmap(single)(points)


def ball_query_group(radius, k, centroids, points, features):
    """Group k neighbors within `radius` of each centroid; pad with first hit
    (falls back to index 0 when the ball is empty, matching the common CUDA
    ball-query behavior).

    centroids: (B, S, 3); points: (B, N, 3); features: (B, N, C)
    returns grouped: (B, k, S, 3 + C)  (local coords / radius, then features)
    """
    B, N, _ = points.shape
    d2 = jnp.sum((centroids[:, :, None, :] - points[:, None, :, :]) ** 2, axis=-1)  # (B,S,N)
    within = d2 <= radius * radius
    arange = jnp.arange(N, dtype=jnp.int32)
    key = jnp.where(within, arange[None, None, :], N)          # sentinel for out-of-ball
    order = jnp.argsort(key, axis=-1)[:, :, :k].astype(jnp.int32)   # first k in-ball idx
    key_sorted = jnp.sort(key, axis=-1)[:, :, :k]
    first = order[:, :, :1]
    idx = jnp.where(key_sorted < N, order, first)               # (B, S, k)

    # Emit directly in the kernel's (B, K, S, C) layout.
    idx_t = jnp.swapaxes(idx, 1, 2)                             # (B, k, S)
    grp_pts = jnp.take_along_axis(points[:, None, :, :], idx_t[..., None], axis=2)     # (B,k,S,3)
    grp_feat = jnp.take_along_axis(features[:, None, :, :], idx_t[..., None], axis=2)  # (B,k,S,C)
    local = (grp_pts - centroids[:, None, :, :]) / radius
    return jnp.concatenate([local, grp_feat], axis=-1)          # (B, k, S, 3+C)


# ----------------------------------------------------------------------------
# Parameter init: Conv2d(1x1, bias=False) + BatchNorm2d folded (eval-mode BN)
# ----------------------------------------------------------------------------
def init_mlp_params(key, in_channels, mlp_units):
    eps = 1e-5
    weights, biases = [], []
    c_in = in_channels
    for c_out in mlp_units:
        key, k1, k2, k3, k4, k5 = jax.random.split(key, 6)
        w = jax.random.normal(k1, (c_in, c_out), jnp.float32) * 0.1   # (C_in, C_out)
        gamma = 1.0 + 0.1 * jax.random.normal(k2, (c_out,), jnp.float32)
        beta = 0.1 * jax.random.normal(k3, (c_out,), jnp.float32)
        mean = 0.1 * jax.random.normal(k4, (c_out,), jnp.float32)
        var = jnp.abs(jax.random.normal(k5, (c_out,), jnp.float32)) + 0.5
        scale = gamma / jnp.sqrt(var + eps)
        weights.append(w * scale[None, :])               # fold BN scale into conv
        biases.append((beta - mean * scale)[None, :])    # fold BN shift into bias
        c_in = c_out
    return weights, biases


# ----------------------------------------------------------------------------
# Forward pass equivalent of PointSetAbstractionLayer.forward
# ----------------------------------------------------------------------------
def point_set_abstraction(points, features, gts, *, stride, radius, k,
                          weights, biases):
    B, N, _ = points.shape
    nsamples = N // stride
    fps_idx = farthest_point_sampling(points, nsamples)                      # (B, S)
    centroids = jnp.take_along_axis(points, fps_idx[..., None], axis=1)      # (B, S, 3)
    new_gts = None
    if gts is not None:
        new_gts = jnp.take_along_axis(gts, fps_idx, axis=1)                  # (B, S)
    grouped = ball_query_group(radius, k, centroids, points, features)       # (B, k, S, 3+C)
    group_features = mlp_max_pallas(grouped, weights, biases)                # (B, S, C_out)
    return centroids, group_features, new_gts


if __name__ == "__main__":
    key = jax.random.PRNGKey(0)

    # Small shapes consistent with the module
    B, N, C_feat = 2, 16, 4
    stride, radius, k = 4, 0.4, 8
    in_channels = 3 + C_feat           # grouped local coords (3) + features (C)
    mlp_units = (16, 32)

    k_pts, k_feat, k_gts, k_par = jax.random.split(key, 4)
    points = jax.random.uniform(k_pts, (B, N, 3), jnp.float32)
    features = jax.random.normal(k_feat, (B, N, C_feat), jnp.float32)
    gts = jax.random.randint(k_gts, (B, N), 0, 5, jnp.int32)

    weights, biases = init_mlp_params(k_par, in_channels, mlp_units)

    centroids, group_features, new_gts = point_set_abstraction(
        points, features, gts,
        stride=stride, radius=radius, k=k, weights=weights, biases=biases)

    jax.block_until_ready((centroids, group_features, new_gts))

    assert centroids.shape == (B, N // stride, 3)
    assert group_features.shape == (B, N // stride, mlp_units[-1])
    assert new_gts.shape == (B, N // stride)
    assert bool(jnp.all(jnp.isfinite(group_features)))
    print("KERNEL_OK")
</pallas_src>

<mosaic_0001>
module attributes {stable_mosaic.version = 11 : i64} {
  func.func @_mlp_max_kernel(%arg0: i32, %arg1: i32, %arg2: i32, %arg3: memref<1x1x4x7xf32, #tpu.memory_space<vmem>>, %arg4: memref<7x128xbf16, #tpu.memory_space<vmem>>, %arg5: memref<1x128xf32, #tpu.memory_space<vmem>>, %arg6: memref<128x128xbf16, #tpu.memory_space<vmem>>, %arg7: memref<1x128xf32, #tpu.memory_space<vmem>>, %arg8: memref<1x4x128xf32, #tpu.memory_space<vmem>>) attributes {dimension_semantics = [#tpu.dimension_semantics<parallel>, #tpu.dimension_semantics<parallel>, #tpu.dimension_semantics<arbitrary>], iteration_bounds = array<i64: 2, 1, 8>, scalar_prefetch = 0 : i64, scratch_operands = 0 : i64, tpu.core_type = #tpu.core_type<tc>, window_params = [{transform_indices = @transform_0, window_bounds = array<i64: 1, 1, 4, 7>}, {pipeline_mode = #tpu.pipeline_mode<synchronous>, transform_indices = @transform_1, window_bounds = array<i64: 7, 128>}, {pipeline_mode = #tpu.pipeline_mode<synchronous>, transform_indices = @transform_2, window_bounds = array<i64: 1, 128>}, {pipeline_mode = #tpu.pipeline_mode<synchronous>, transform_indices = @transform_3, window_bounds = array<i64: 128, 128>}, {pipeline_mode = #tpu.pipeline_mode<synchronous>, transform_indices = @transform_4, window_bounds = array<i64: 1, 128>}, {transform_indices = @transform_5, window_bounds = array<i64: 1, 4, 128>}]} {
    %c0_i32 = arith.constant 0 : i32
    %0 = arith.cmpi eq, %arg2, %c0_i32 : i32
    %1 = arith.extui %0 : i1 to i32
    %c0_i32_0 = arith.constant 0 : i32
    %2 = arith.cmpi ne, %1, %c0_i32_0 : i32
    scf.if %2 {
      %cst_21 = arith.constant 0xFF800000 : f32
      %27 = vector.broadcast %cst_21 : f32 to vector<1x4x128xf32>
      %c0_22 = arith.constant 0 : index
      %c0_23 = arith.constant 0 : index
      %c0_24 = arith.constant 0 : index
      %28 = vector.load %arg8[%c0_22, %c0_23, %c0_24] : memref<1x4x128xf32, #tpu.memory_space<vmem>>, vector<1x4x128xf32>
      tpu.vector_store %arg8[%c0_22, %c0_23, %c0_24], %27 {strides = array<i32>} : memref<1x4x128xf32, #tpu.memory_space<vmem>>, vector<1x4x128xf32>,
    } else {
    }
    %c0 = arith.constant 0 : index
    %c0_1 = arith.constant 0 : index
    %c0_2 = arith.constant 0 : index
    %c0_3 = arith.constant 0 : index
    %3 = vector.load %arg3[%c0, %c0_1, %c0_2, %c0_3] : memref<1x1x4x7xf32, #tpu.memory_space<vmem>>, vector<1x1x4x7xf32>
    %4 = vector.shape_cast %3 : vector<1x1x4x7xf32> to vector<4x7xf32>
    %c0_4 = arith.constant 0 : index
    %c0_5 = arith.constant 0 : index
    %5 = vector.load %arg4[%c0_4, %c0_5] : memref<7x128xbf16, #tpu.memory_space<vmem>>, vector<7x128xbf16>
    %c0_6 = arith.constant 0 : index
    %c0_7 = arith.constant 0 : index
    %6 = vector.load %arg5[%c0_6, %c0_7] : memref<1x128xf32, #tpu.memory_space<vmem>>, vector<1x128xf32>
    %7 = arith.truncf %4 : vector<4x7xf32> to vector<4x7xbf16>
    %cst = arith.constant dense<0.000000e+00> : vector<4x128xf32>
    %8 = tpu.matmul %7, %5, %cst {dimension_numbers = #tpu.dot_dimension_numbers<[1], [0], [0], [1], [0, 0, 1, 1], [], []>} : vector<4x7xbf16>, vector<7x128xbf16>, vector<4x128xf32> -> vector<4x128xf32>
    %9 = vector.broadcast %6 : vector<1x128xf32> to vector<4x128xf32>
    %10 = arith.addf %8, %9 : vector<4x128xf32>
    %cst_8 = arith.constant 0.000000e+00 : f32
    %11 = vector.broadcast %cst_8 : f32 to vector<4x128xf32>
    %12 = arith.maximumf %10, %11 : vector<4x128xf32>
    %c0_9 = arith.constant 0 : index
    %c0_10 = arith.constant 0 : index
    %13 = vector.load %arg6[%c0_9, %c0_10] : memref<128x128xbf16, #tpu.memory_space<vmem>>, vector<128x128xbf16>
    %c0_11 = arith.constant 0 : index
    %c0_12 = arith.constant 0 : index
    %14 = vector.load %arg7[%c0_11, %c0_12] : memref<1x128xf32, #tpu.memory_space<vmem>>, vector<1x128xf32>
    %15 = arith.truncf %12 : vector<4x128xf32> to vector<4x128xbf16>
    %cst_13 = arith.constant dense<0.000000e+00> : vector<4x128xf32>
    %16 = tpu.matmul %15, %13, %cst_13 {dimension_numbers = #tpu.dot_dimension_numbers<[1], [0], [0], [1], [0, 0, 1, 1], [], []>} : vector<4x128xbf16>, vector<128x128xbf16>, vector<4x128xf32> -> vector<4x128xf32>
    %17 = vector.broadcast %14 : vector<1x128xf32> to vector<4x128xf32>
    %18 = arith.addf %16, %17 : vector<4x128xf32>
    %cst_14 = arith.constant 0.000000e+00 : f32
    %19 = vector.broadcast %cst_14 : f32 to vector<4x128xf32>
    %20 = arith.maximumf %18, %19 : vector<4x128xf32>
    %c0_15 = arith.constant 0 : index
    %c0_16 = arith.constant 0 : index
    %c0_17 = arith.constant 0 : index
    %21 = vector.load %arg8[%c0_15, %c0_16, %c0_17] : memref<1x4x128xf32, #tpu.memory_space<vmem>>, vector<1x4x128xf32>
    %22 = vector.shape_cast %21 : vector<1x4x128xf32> to vector<4x128xf32>
    %23 = arith.maximumf %22, %20 : vector<4x128xf32>
    %c0_18 = arith.constant 0 : index
    %c0_19 = arith.constant 0 : index
    %c0_20 = arith.constant 0 : index
    %24 = vector.load %arg8[%c0_18, %c0_19, %c0_20] : memref<1x4x128xf32, #tpu.memory_space<vmem>>, vector<1x4x128xf32>
    %25 = vector.shape_cast %24 : vector<1x4x128xf32> to vector<4x128xf32>
    %26 = vector.shape_cast %23 : vector<4x128xf32> to vector<1x4x128xf32>
    tpu.vector_store %arg8[%c0_18, %c0_19, %c0_20], %26 {strides = array<i32>} : memref<1x4x128xf32, #tpu.memory_space<vmem>>, vector<1x4x128xf32>,
    return
  }
  func.func @transform_0(%arg0: i32, %arg1: i32, %arg2: i32) -> (i32, i32, i32, i32) {
    %c0_i32 = arith.constant 0 : i32
    %c0_i32_0 = arith.constant 0 : i32
    return %arg0, %arg2, %arg1, %c0_i32 : i32, i32, i32, i32
  }
  func.func @transform_1(%arg0: i32, %arg1: i32, %arg2: i32) -> (i32, i32) {
    %c0_i32 = arith.constant 0 : i32
    %c0_i32_0 = arith.constant 0 : i32
    %c0_i32_1 = arith.constant 0 : i32
    return %c0_i32, %c0_i32_0 : i32, i32
  }
  func.func @transform_2(%arg0: i32, %arg1: i32, %arg2: i32) -> (i32, i32) {
    %c0_i32 = arith.constant 0 : i32
    %c0_i32_0 = arith.constant 0 : i32
    %c0_i32_1 = arith.constant 0 : i32
    return %c0_i32, %c0_i32_0 : i32, i32
  }
  func.func @transform_3(%arg0: i32, %arg1: i32, %arg2: i32) -> (i32, i32) {
    %c0_i32 = arith.constant 0 : i32
    %c0_i32_0 = arith.constant 0 : i32
    %c0_i32_1 = arith.constant 0 : i32
    return %c0_i32, %c0_i32_0 : i32, i32
  }
  func.func @transform_4(%arg0: i32, %arg1: i32, %arg2: i32) -> (i32, i32) {
    %c0_i32 = arith.constant 0 : i32
    %c0_i32_0 = arith.constant 0 : i32
    %c0_i32_1 = arith.constant 0 : i32
    return %c0_i32, %c0_i32_0 : i32, i32
  }
  func.func @transform_5(%arg0: i32, %arg1: i32, %arg2: i32) -> (i32, i32, i32) {
    %c0_i32 = arith.constant 0 : i32
    %c0_i32_0 = arith.constant 0 : i32
    return %arg0, %arg1, %c0_i32 : i32, i32, i32
  }
}

</mosaic_0001>

<bundles_post_ra>
// kernel: tpu_custom_call.1
= control target key start
LH: loop header
LB: loop body
LE: loop exit
PB: predicated region body
PF: predicated region fallthrough
CT: control target
= control target key end

     0   :  { %10 = vsyncpa [#allocation3], 0  ;;  %s1001_s0 = inlined_call_operand.vmem [shape: f32[2,8,4,7], index: 0, kind: input, shape index: {}]   ;;  %s1002_s1 = inlined_call_operand.vmem [shape: bf16[7,128], index: 1, kind: input, shape index: {}]   ;;  %s1003_s2 = inlined_call_operand.vmem [shape: f32[1,128], index: 2, kind: input, shape index: {}]   ;;  %s1004_s3 = inlined_call_operand.vmem [shape: bf16[128,128], index: 3, kind: input, shape index: {}]   ;;  %s1005_s4 = inlined_call_operand.vmem [shape: f32[1,128], index: 4, kind: input, shape index: {}]   ;;  %s1006_s5 = inlined_call_operand.hbm [shape: f32[2,4,128], index: 5, kind: output, shape index: {}]  }
   0x1   :  { %12 = vsyncpa [#allocation3 + $0x1], 0  ;;  %s823_s18 = smov 0   ;;  %s825_s19 = smov 0  }
   0x2   :  { %s827_s20 = smov 0   ;;  %s829_s21 = smov 0  }
   0x3   :  { %s831_s22 = smov 0   ;;  %s833_s23 = smov 0  }
   0x4   :  { %s835_s24 = smov 0   ;;  %s837_s25 = smov 0  }
   0x5 LB: > { %s548_s26 = sadd.s32 4294967295, %s786_s25   ;;  %s549_s27 = sadd.s32 4294967294, %s786_s25   ;;  %s786_s25 = sphi %s837_s25, %s18_s25   ;;  %s782_s24 = sphi %s835_s24, %s1017_s24   ;;  %s778_s23 = sphi %s833_s23, %s1016_s23   ;;  %s774_s22 = sphi %s831_s22, %s1015_s22   ;;  %s770_s21 = sphi %s829_s21, %s1014_s21   ;;  %s766_s20 = sphi %s827_s20, %s1013_s20   ;;  %s762_s19 = sphi %s825_s19, %s1012_s19   ;;  %s758_s18 = sphi %s823_s18, %s1011_s18  }
   0x6   : > { %s30_s28 = sadd.s32 1, %s778_s23  ;;  %s37_s29 = sadd.s32 1, %s782_s24 }
   0x7   : > { %p31_p0 = scmp.ge.s32.totalorder %s30_s28, 8  ;;  %p170_p1 = scmp.ne.s32.totalorder %s766_s20, %s762_s19 }
   0x8   : > { %p171_p2 = scmp.eq.s32.totalorder %s548_s26, 15  ;;  %p176_p4 = scmp.ne.s32.totalorder %s762_s19, %s758_s18 }
   0x9   : > { %s1019_s28 = smov (%p31_p0, %s30_s28), 0  ;;  %s1021_s29 = smov (!%p31_p0, %s37_s29), %s782_s24 }
   0xa   : > { %p872_p3 = por %p171_p2, %p170_p1  ;;  %p39_p5 = scmp.ge.s32.totalorder %s1021_s29, 2 }
   0xb   : > { %p177_p6 = scmp.eq.s32.totalorder %s549_s27, 15  ;;  %p552_p7 = scmp.ge.s32.totalorder %s786_s25, 1 }
   0xc   : > { %p221_p8 = scmp.lt.s32.totalorder %s786_s25, 17  ;;  %s1023_s29 = smov (%p39_p5, %s1021_s29), 0 }
   0xd   : > { %p882_p9 = por %p177_p6, %p176_p4  ;;  %s155_s7 = ssub.s32 %s782_s24, %s1023_s29 }
   0xe   : > { %p222_p10 = pnand %p552_p7, %p221_p8  ;;  %s160_s8 = sadd.s32 1, %s766_s20 }
   0xf   : > { %p158_p11 = scmp.eq.s32.totalorder %s155_s7, 0  ;;  %s1007_s10 = sand.u32 (!%p222_p10), 1, %s762_s19  }
  0x10   : > { %225 = sbr.rel (%p222_p10) target bundleno = 490 (0x1ea), region = 40  ;;  %p255_p12 = scmp.lt.s32.totalorder (!%p222_p10), %s774_s22, 1 }
  0x11   : > { %s890_s9 = scalar_select %p158_p11, %s766_s20, %s160_s8  }
  0x12   : > { %s553_s11 = sshll.u32 (!%p222_p10), %s1007_s10, 2  ;;  %p257_p13 = scmp.lt.s32.totalorder (!%p222_p10), %s770_s21, 7 }
  0x13   : > { %s902_s7 = scalar_lea.vmem (!%p222_p10), [#allocation2], %s553_s11  ;;  %p556_p0 = scmp.ne.s32.totalorder (!%p222_p10), %s770_s21, 0 }
  0x17   : > { %s256_s12 = scalar_select %p255_p12, %s774_s22, 1 }
  0x18   : > { %s258_s13 = scalar_select %p257_p13, %s770_s21, 7 }
  0x19   : > { %s554_s14 = sshll.u32 %s256_s12, 3  ;;  %270 = sbr.rel (%p556_p0) target bundleno = 32 (0x20), region = 44  ;;  %v788_v0 = vmov (!%p556_p0), -inf  }
  0x1a   : > { %s263_s15 = sadd.s32 %s554_s14, %s258_s13  ;;  %271 = vst [vmem:[%s902_s7] sm:$0xf] (!%p556_p0), %v788_v0 }
  0x1b   : > { %s555_s16 = sshll.u32 %s263_s15, 2 }
  0x1c   : > { %s265_s27 = scalar_lea.vmem %s1001_s0, %s555_s16 }
  0x20 PF: > { %v273_v1 = vld [vmem:[%s1002_s1] sm:$0xf]  ;;  %vm286_vm0 = vcmask 1042432   ;;  %vm287_vm1 = vcmask 1043456   ;;  %v789_v2 = vmov 0.0   ;;  %v790_v3 = vmov 65535  }
  0x21   : > { %583 = vmatprep.subr.bf16.mxu0 %v789_v2  ;;  %v288_v4 = vsel %vm286_vm0, 4294967295, %v790_v3  ;;  %v272_v5 = vld [vmem:[%s265_s27] sm:$0xf]  ;;  %589 = vmatprep.subr.bf16.mxu1 %v789_v2  ;;  %vm791_vm2 = vmmov 0   ;;  %v685_v8 = vld [vmem:[%s1004_s3 + $0x8] sm:$0xff]   ;;  %vm282_vm3 = vcmask 56320  }
  0x22   : > { %v684_v6 = vld [vmem:[%s1004_s3] sm:$0xff]   ;;  %v289_v7 = vsel %vm287_vm1, %v288_v4, 0  ;;  %585 = vmatprep.mubr.msk.bf16.mxu0 %vm791_vm2, %v789_v2  ;;  %605 = vmatprep.mubr.msk.bf16.mxu1 %vm791_vm2, %v789_v2  ;;  %v275_v10 = vpack.c.bf16 %v272_v5, %v272_v5  ;;  %v686_v11 = vld [vmem:[%s1004_s3 + $0x10] sm:$0xff]   ;;  %v687_v12 = vld [vmem:[%s1004_s3 + $0x18] sm:$0xff]   ;;  %s569_s17 = sshll.u32 %s774_s22, 6  ;;  %s465_s26 = sshll.u32 %s902_s7, 4  ;;  %s947_s26 = int_to_ptr.vmem [resolvable:$true] %s465_s26 }
  0x23   : > { %v291_v9 = vand.u32 %v289_v7, %v273_v1  ;;  %590 = vmatpush3.bf16.msra.mxu1 %v684_v6  ;;  %v688_v13 = vld [vmem:[%s1004_s3 + $0x20] sm:$0xff]   ;;  %v689_v14 = vld [vmem:[%s1004_s3 + $0x28] sm:$0xff]   ;;  %v690_v15 = vld [vmem:[%s1004_s3 + $0x30] sm:$0xff]   ;;  %s945_s11 = scalar_lea.hbm %s1006_s5, %s569_s17  ;;  %s1010_s12 = sand.u32 1, %s762_s19  }
  0x24   : > { %591 = vmatprep.subr.bf16.mxu1 %v789_v2  ;;  %v691_v16 = vld [vmem:[%s1004_s3 + $0x38] sm:$0xff]   ;;  %v557_v17 = vld [vmem:[%s1003_s2] ss:$0 sm:$0xff]  ;;  %s451_s21 = scalar_lea.sflag [#allocation3], %s1010_s12  ;;  %s692_s13 = scalar_lea.vmem %s947_s26, 64 }
  0x25   : > { %584 = vmatpush3.bf16.msra.mxu0 %v291_v9  ;;  %v559_v25 = vld [vmem:[%s1005_s4] ss:$0 sm:$0xff]  ;;  %p693_p1 = scmp.ne.s32.totalorder %s947_s26, %s692_s13  ;;  %s792_s22 = smov [#allocation2]  }
  0x26   : > { %v447_v29 = vld [vmem:[%s902_s7] sm:$0xf]  ;;  %s696_s10 = sshll.u32 %s792_s22, 4  ;;  %s697_s10 = int_to_ptr.vmem [resolvable:$false] %s696_s10 }
  0x27   : > { %592 = vmatpush3.bf16.msra.mxu1 %v685_v8  ;;  %p694_p2 = pnand %p693_p1, %p872_p3  ;;  %s698_s14 = scalar_lea.vmem %s697_s10, 128 }
  0x28   : > { %586 = vmatmul.mubr.msk.bf16.vlgmr.msra.gmra.mrb[0].mxu0 %vm282_vm3, %v275_v10  ;;  %593 = vmatprep.subr.bf16.mxu1 %v789_v2  ;;  %p699_p5 = scmp.lt.s32.totalorder %s947_s26, %s697_s10  ;;  %p700_p6 = scmp.lt.s32.totalorder %s698_s14, %s692_s13 }
  0x29   : > { %p695_p4 = pneg %p694_p2 }
  0x2a   : > { %p701_p7 = por %p700_p6, %p699_p5 }
  0x2b   : > { %594 = vmatpush3.bf16.msra.mxu1 %v686_v11 }
  0x2c   : > { %595 = vmatprep.subr.bf16.mxu1 %v789_v2  ;;  %p702_p8 = pnand %p701_p7, %p695_p4 }
  0x2f   : > { %596 = vmatpush3.bf16.msra.mxu1 %v687_v12 }
  0x30   : > { %597 = vmatprep.subr.bf16.mxu1 %v789_v2 }
  0x33   : > { %598 = vmatpush3.bf16.msra.mxu1 %v688_v13 }
  0x34   : > { %599 = vmatprep.subr.bf16.mxu1 %v789_v2 }
  0x37   : > { %600 = vmatpush3.bf16.msra.mxu1 %v689_v14 }
  0x38   : > { %601 = vmatprep.subr.bf16.mxu1 %v789_v2 }
  0x3b   : > { %602 = vmatpush3.bf16.msra.mxu1 %v690_v15 }
  0x3c   : > { %603 = vmatprep.subr.bf16.mxu1 %v789_v2 }
  0x3f   : > { %604 = vmatpush3.bf16.msra.mxu1 %v691_v16 }
  0xfb   : > { %v327_v18 = vpop.f32.mrb[0].mxu0 }
  0xfc   : > { %v328_v19 = vadd.f32 %v557_v17, %v327_v18  ;;  %v587_v20 = vpop.f32.mrb[1].mxu0 }
  0xfd   : > { %v330_v21 = vpop.f32.mrb[2].mxu0 }
  0xfe   : > { %v333_v22 = vmax.f32 %v328_v19, 0.0  ;;  %v588_v23 = vpop.f32.mrb[3].mxu0 }
 0x100   : > { %v351_v24 = vpack.c.bf16 %v333_v22, %v333_v22 }
 0x102   : > { %606 = vmatmul.mubr.bf16.vlgmr.msra.gmra.mrb[0].mxu1 %v351_v24 }
 0x1d5   : > { %v440_v26 = vpop.f32.mrb[0].mxu1 }
 0x1d6   : > { %v441_v27 = vadd.f32 %v559_v25, %v440_v26  ;;  %v607_v28 = vpop.f32.mrb[1].mxu1 }
 0x1d7   : > { %v443_v30 = vpop.f32.mrb[2].mxu1 }
 0x1d8   : > { %v446_v31 = vmax.f32 %v441_v27, 0.0  ;;  %v608_v32 = vpop.f32.mrb[3].mxu1 }
 0x1da   : > { %v448_v33 = vmax.f32 %v447_v29, %v446_v31 }
 0x1dc   : > { %449 = vst [vmem:[%s902_s7] sm:$0xf] %v448_v33 }
 0x1dd   : > { %705 = shalt.err (!%p702_p8)
}
 0x1de   : > { %s706_s7 = scalar_lea.hbm %s945_s11, 64  ;;  %s710_s17 = scalar_lea.hbm %s1006_s5, 128 }
 0x1df   : > { %p707_p10 = scmp.ne.s32.totalorder %s945_s11, %s706_s7  ;;  %p711_p13 = scmp.lt.u32.totalorder %s945_s11, %s1006_s5 }
 0x1e0   : > { %p712_p0 = scmp.lt.u32.totalorder %s710_s17, %s706_s7  ;;  %p714_p2 = scmp.lt.u32.totalorder %s706_s7, %s945_s11 }
 0x1e1   : > { %p708_p11 = pnand %p707_p10, %p872_p3 }
 0x1e2   : > { %p713_p1 = por %p712_p0, %p711_p13 }
 0x1e3   : > { %p709_p12 = pneg %p708_p11 }
 0x1e4   : > { %p715_p4 = por %p714_p2, %p713_p1 }
 0x1e6   : > { %p716_p5 = pnand %p715_p4, %p709_p12 }
 0x1e8   : > { %719 = shalt.err (!%p716_p5)
}
 0x1e9   : > { %609 = dma.vmem_to_hbm [thread:$0]  (%p872_p3), %s947_s26, 64, %s945_s11, %s451_s21  }
 0x1ea PF: > { %p615_p6 = scmp.ge.s32.totalorder %s786_s25, 2  ;;  %s477_s12 = sand.u32 1, %s758_s18  }
 0x1eb   : > { %s478_s13 = scalar_lea.sflag [#allocation3], %s477_s12 }
 0x1ec   : > { %p612_p7 = pnand %p615_p6, %p882_p9 }
 0x1ee   : > { %753 = dma.done.wait (!%p612_p7), %s478_s13, 64  }
 0x1ef   : > { %755 = vsyncadd (!%p612_p7), %s478_s13, 4294967232  ;;  %s18_s25 = sadd.s32 1, %s786_s25   ;;  %s1011_s18 = smov %s762_s19 }
 0x1f0   : > { %p15_p8 = scmp.ge.s32.totalorder %s18_s25, 18   ;;  %s1012_s19 = smov %s766_s20 }
 0x1f1   : > { %s1013_s20 = smov %s890_s9  ;;  %s1014_s21 = smov %s778_s23 }
 0x1f2   : > { %s1015_s22 = smov %s782_s24  ;;  %s1016_s23 = smov %s1019_s28 }
 0x1f3   : > { %s1017_s24 = smov %s1023_s29  ;;  %17 = sbr.rel (!%p15_p8) target bundleno = 5 (0x5), region = 79 }
 0x1fa   :  { %483 = vsyncpa [#allocation3], 1 }
 0x1fb   :  { %485 = vsyncpa [#allocation3 + $0x1], 1 }

</bundles_post_ra>
